<compile_context>
chip_gen: v7x
topology: tpu7x:2x2x1
jax: 0.10.0
libtpu: 0.0.40
codegen_flags: <defaults>
</compile_context>

<pallas_src>
import jax
import jax.numpy as jnp
from jax.experimental import pallas as pl
from jax.experimental.pallas import tpu as pltpu


def dan_batch_kernel(x_ref, z_ref, vw_ref, vb_ref, ww_ref, wb_ref, out_ref, acc_ref):
    s = pl.program_id(1)

    # Partial sequence sum of this (TB, TS, E) chunk.  Explicit upcast so a
    # bf16-streamed x is reduced in f32 (required on v5e, exact everywhere).
    partial = jnp.sum(x_ref[...].astype(jnp.float32), axis=1)        # (TB, E)

    # Fused init + first accumulate (no separate zero write/read of the scratch).
    @pl.when(s == 0)
    def _first():
        acc_ref[...] = partial

    @pl.when(s > 0)
    def _accum():
        acc_ref[...] += partial

    # ---- finalize: scale, MLP, log_softmax, store ----
    @pl.when(s == pl.num_programs(1) - 1)
    def _finalize():
        inv_z = pl.reciprocal(z_ref[...], approx=False)   # exact divide, (TB, 1)
        # (sum @ Vw) * (1/z) == (sum * (1/z)) @ Vw  (per-row scale commutes),
        # so apply it after the matmul over TB*H elements instead of TB*E.
        h = jnp.dot(acc_ref[...], vw_ref[...],
                    preferred_element_type=jnp.float32) * inv_z + vb_ref[...]  # (TB, H)
        h = jnp.maximum(h, 0.0)                           # ReLU
        # TODO(synk): train-mode dropout(p=0.5) mask not implemented (identity at eval).
        logits = jnp.dot(h, ww_ref[...],
                         preferred_element_type=jnp.float32) + wb_ref[...]     # (TB, C)
        m = jnp.max(logits, axis=-1, keepdims=True)
        shifted = logits - m
        lse = jnp.log(jnp.sum(jnp.exp(shifted), axis=-1, keepdims=True))
        out_ref[...] = shifted - lse


def _round_up(n, m):
    return ((n + m - 1) // m) * m


def dan_batch_forward(x, z, v_w, v_b, w_w, w_b, *, tb=None, ts=None):
    """x: (B,S,E) f32 or bf16, z: (B,1) f32 lengths (>0), v_w: (E,H), v_b: (1,H),
    w_w: (H,C), w_b: (1,C).  Output: (B,C) f32 log-probabilities."""
    B, S, E = x.shape
    H = v_w.shape[1]
    C = w_w.shape[1]

    x_itemsize = jnp.dtype(x.dtype).itemsize
    seq_mult = 16 if x_itemsize < 4 else 8     # sublane multiple for packed dtypes

    # ---- batch tile: up to 128 rows, but guarantee >= 2 tiles for megacore ----
    if tb is None:
        tb = min(128, _round_up(B, 8))
        if _round_up(B, tb) // tb < 2 and B > 8:
            tb = max(8, _round_up(pl.cdiv(B, 2), 8))

    # ---- sequence chunk: as big as fits a ~24 MiB double-buffered x budget ----
    if ts is None:
        x_budget = 24 * 1024 * 1024
        ts_cap = max(seq_mult,
                     (x_budget // (2 * tb * E * x_itemsize)) // seq_mult * seq_mult)
        ts = min(256, ts_cap, _round_up(S, seq_mult))

    B_pad = _round_up(B, tb)
    S_pad = _round_up(S, ts)

    if B_pad != B or S_pad != S:
        # Zero-pad the sequence axis (zeros add nothing to the sum) and the
        # batch axis; padded rows get z=1 to avoid div-by-zero and are sliced off.
        x = jnp.pad(x, ((0, B_pad - B), (0, S_pad - S), (0, 0)))
        z = jnp.pad(z, ((0, B_pad - B), (0, 0)), constant_values=1.0)

    grid = (B_pad // tb, S_pad // ts)

    # VMEM estimate (double-buffered inputs/outputs + resident weights + scratch),
    # clamped to [32 MiB, 48 MiB] so it always fits v7x's 64 MiB physical VMEM.
    est = (2 * tb * ts * E * x_itemsize           # x double-buffer
           + 2 * tb * 4                           # z
           + 2 * (E * H + H + H * C + C) * 4      # weights / biases
           + 2 * tb * C * 4                       # output tile
           + tb * E * 4)                          # accumulator scratch
    vmem_limit = min(48 * 1024 * 1024, max(32 * 1024 * 1024, int(est * 1.25)))

    grid_spec = pltpu.PrefetchScalarGridSpec(
        num_scalar_prefetch=0,
        grid=grid,
        in_specs=[
            pl.BlockSpec((tb, ts, E), lambda b, s: (b, s, 0)),   # x: streamed/pipelined
            pl.BlockSpec((tb, 1), lambda b, s: (b, 0)),          # z: per batch tile
            pl.BlockSpec((E, H), lambda b, s: (0, 0)),           # V weight: VMEM-resident
            pl.BlockSpec((1, H), lambda b, s: (0, 0)),           # V bias
            pl.BlockSpec((H, C), lambda b, s: (0, 0)),           # W weight
            pl.BlockSpec((1, C), lambda b, s: (0, 0)),           # W bias
        ],
        out_specs=pl.BlockSpec((tb, C), lambda b, s: (b, 0)),    # same block across s
        scratch_shapes=[pltpu.VMEM((tb, E), jnp.float32)],       # sequence-sum accumulator
    )

    out = pl.pallas_call(
        dan_batch_kernel,
        out_shape=jax.ShapeDtypeStruct((B_pad, C), jnp.float32),
        grid_spec=grid_spec,
        compiler_params=pltpu.CompilerParams(
            dimension_semantics=("parallel", "arbitrary"),
            vmem_limit_bytes=vmem_limit,
        ),
    )(x, z, v_w, v_b, w_w, w_b)

    return out[:B]


def dan_batch_reference(x, z, v_w, v_b, w_w, w_b):
    avg = jnp.sum(x.astype(jnp.float32), axis=1) / z
    h = jnp.maximum(avg @ v_w + v_b, 0.0)
    logits = h @ w_w + w_b
    return jax.nn.log_softmax(logits, axis=-1)


if __name__ == "__main__":
    # Small deterministic shapes consistent with the module's forward.
    # B not divisible by the tile and multiple S chunks, so padding + the
    # multi-step sequence reduction are both exercised.
    B, S, E, H, C = 40, 48, 128, 128, 8   # batch, seq, emb_dim, n_hidden_units, n_classes

    key = jax.random.PRNGKey(0)
    k_x, k_z, k_vw, k_vb, k_ww, k_wb = jax.random.split(key, 6)

    # Embeddings streamed natively as bf16 (halves HBM traffic on the dominant
    # input); accumulation inside the kernel stays f32.
    x = jax.random.normal(k_x, (B, S, E), dtype=jnp.float32).astype(jnp.bfloat16)
    # per-example sequence lengths (integers per the LongTensor cast), as f32 for division
    z = jax.random.randint(k_z, (B, 1), minval=1, maxval=S + 1).astype(jnp.float32)

    # Deterministic parameter init (nn.Linear-like uniform), weights stored (in, out) = W^T
    def linear_init(kw, fan_in, shape):
        bound = 1.0 / jnp.sqrt(fan_in)
        return jax.random.uniform(kw, shape, minval=-bound, maxval=bound, dtype=jnp.float32)

    v_w = linear_init(k_vw, E, (E, H))
    v_b = linear_init(k_vb, E, (1, H))
    w_w = linear_init(k_ww, H, (H, C))
    w_b = linear_init(k_wb, H, (1, C))

    ref = dan_batch_reference(x, z, v_w, v_b, w_w, w_b)

    # 1) Small explicit tiles so this toy example runs a real (3, 3) grid.
    out_small = dan_batch_forward(x, z, v_w, v_b, w_w, w_b, tb=16, ts=16)
    out_small = jax.block_until_ready(out_small)
    assert out_small.shape == (B, C)
    assert jnp.allclose(out_small, ref, atol=2e-5, rtol=1e-4), "kernel (small tiles) mismatch"

    # 2) Default tile selection: collapsed S axis, >=2 batch tiles (megacore path).
    out_default = dan_batch_forward(x, z, v_w, v_b, w_w, w_b)
    out_default = jax.block_until_ready(out_default)
    assert out_default.shape == (B, C)
    assert jnp.allclose(out_default, ref, atol=2e-5, rtol=1e-4), "kernel (default tiles) mismatch"

    print("KERNEL_OK")
</pallas_src>

<mosaic_0001>
module attributes {stable_mosaic.version = 11 : i64} {
  func.func @dan_batch_kernel(%arg0: i32, %arg1: i32, %arg2: memref<16x16x128xbf16, #tpu.memory_space<vmem>>, %arg3: memref<16x1xf32, #tpu.memory_space<vmem>>, %arg4: memref<128x128xf32, #tpu.memory_space<vmem>>, %arg5: memref<1x128xf32, #tpu.memory_space<vmem>>, %arg6: memref<128x8xf32, #tpu.memory_space<vmem>>, %arg7: memref<1x8xf32, #tpu.memory_space<vmem>>, %arg8: memref<16x8xf32, #tpu.memory_space<vmem>>, %arg9: memref<16x128xf32, #tpu.memory_space<vmem>>) attributes {dimension_semantics = [#tpu.dimension_semantics<parallel>, #tpu.dimension_semantics<arbitrary>], iteration_bounds = array<i64: 3, 3>, scalar_prefetch = 0 : i64, scratch_operands = 1 : i64, tpu.core_type = #tpu.core_type<tc>, window_params = [{transform_indices = @transform_0, window_bounds = array<i64: 16, 16, 128>}, {transform_indices = @transform_1, window_bounds = array<i64: 16, 1>}, {pipeline_mode = #tpu.pipeline_mode<synchronous>, transform_indices = @transform_2, window_bounds = array<i64: 128, 128>}, {pipeline_mode = #tpu.pipeline_mode<synchronous>, transform_indices = @transform_3, window_bounds = array<i64: 1, 128>}, {pipeline_mode = #tpu.pipeline_mode<synchronous>, transform_indices = @transform_4, window_bounds = array<i64: 128, 8>}, {pipeline_mode = #tpu.pipeline_mode<synchronous>, transform_indices = @transform_5, window_bounds = array<i64: 1, 8>}, {transform_indices = @transform_6, window_bounds = array<i64: 16, 8>}]} {
    %c0 = arith.constant 0 : index
    %c0_0 = arith.constant 0 : index
    %c0_1 = arith.constant 0 : index
    %0 = vector.load %arg2[%c0, %c0_0, %c0_1] : memref<16x16x128xbf16, #tpu.memory_space<vmem>>, vector<16x16x128xbf16>
    %1 = arith.extf %0 : vector<16x16x128xbf16> to vector<16x16x128xf32>
    %cst = arith.constant dense<0.000000e+00> : vector<16x128xf32>
    %2 = vector.multi_reduction <add>, %1, %cst [1] : vector<16x16x128xf32> to vector<16x128xf32>
    %c0_i32 = arith.constant 0 : i32
    %3 = arith.cmpi eq, %arg1, %c0_i32 : i32
    %4 = arith.extui %3 : i1 to i32
    %c0_i32_2 = arith.constant 0 : i32
    %5 = arith.cmpi ne, %4, %c0_i32_2 : i32
    scf.if %5 {
      %c0_6 = arith.constant 0 : index
      %c0_7 = arith.constant 0 : index
      %12 = vector.load %arg9[%c0_6, %c0_7] : memref<16x128xf32, #tpu.memory_space<vmem>>, vector<16x128xf32>
      tpu.vector_store %arg9[%c0_6, %c0_7], %2 {strides = array<i32>} : memref<16x128xf32, #tpu.memory_space<vmem>>, vector<16x128xf32>,
    } else {
    }
    %c0_i32_3 = arith.constant 0 : i32
    %6 = arith.cmpi sgt, %arg1, %c0_i32_3 : i32
    %7 = arith.extui %6 : i1 to i32
    %c0_i32_4 = arith.constant 0 : i32
    %8 = arith.cmpi ne, %7, %c0_i32_4 : i32
    scf.if %8 {
      %c0_6 = arith.constant 0 : index
      %c0_7 = arith.constant 0 : index
      %12 = vector.load %arg9[%c0_6, %c0_7] : memref<16x128xf32, #tpu.memory_space<vmem>>, vector<16x128xf32>
      %13 = arith.addf %12, %2 : vector<16x128xf32>
      %c0_8 = arith.constant 0 : index
      %c0_9 = arith.constant 0 : index
      %14 = vector.load %arg9[%c0_8, %c0_9] : memref<16x128xf32, #tpu.memory_space<vmem>>, vector<16x128xf32>
      tpu.vector_store %arg9[%c0_8, %c0_9], %13 {strides = array<i32>} : memref<16x128xf32, #tpu.memory_space<vmem>>, vector<16x128xf32>,
    } else {
    }
    %c2_i32 = arith.constant 2 : i32
    %9 = arith.cmpi eq, %arg1, %c2_i32 : i32
    %10 = arith.extui %9 : i1 to i32
    %c0_i32_5 = arith.constant 0 : i32
    %11 = arith.cmpi ne, %10, %c0_i32_5 : i32
    scf.if %11 {
      %c0_6 = arith.constant 0 : index
      %c0_7 = arith.constant 0 : index
      %12 = vector.load %arg3[%c0_6, %c0_7] : memref<16x1xf32, #tpu.memory_space<vmem>>, vector<16x1xf32>
      %13 = tpu.reciprocal %12 : vector<16x1xf32> -> vector<16x1xf32>
      %c0_8 = arith.constant 0 : index
      %c0_9 = arith.constant 0 : index
      %14 = vector.load %arg9[%c0_8, %c0_9] : memref<16x128xf32, #tpu.memory_space<vmem>>, vector<16x128xf32>
      %c0_10 = arith.constant 0 : index
      %c0_11 = arith.constant 0 : index
      %15 = vector.load %arg4[%c0_10, %c0_11] : memref<128x128xf32, #tpu.memory_space<vmem>>, vector<128x128xf32>
      %cst_12 = arith.constant dense<0.000000e+00> : vector<16x128xf32>
      %16 = tpu.matmul %14, %15, %cst_12 {dimension_numbers = #tpu.dot_dimension_numbers<[1], [0], [0], [1], [0, 0, 1, 1], [], []>} : vector<16x128xf32>, vector<128x128xf32>, vector<16x128xf32> -> vector<16x128xf32>
      %17 = vector.broadcast %13 : vector<16x1xf32> to vector<16x128xf32>
      %18 = arith.mulf %16, %17 : vector<16x128xf32>
      %c0_13 = arith.constant 0 : index
      %c0_14 = arith.constant 0 : index
      %19 = vector.load %arg5[%c0_13, %c0_14] : memref<1x128xf32, #tpu.memory_space<vmem>>, vector<1x128xf32>
      %20 = vector.broadcast %19 : vector<1x128xf32> to vector<16x128xf32>
      %21 = arith.addf %18, %20 : vector<16x128xf32>
      %cst_15 = arith.constant 0.000000e+00 : f32
      %22 = vector.broadcast %cst_15 : f32 to vector<16x128xf32>
      %23 = arith.maximumf %21, %22 : vector<16x128xf32>
      %c0_16 = arith.constant 0 : index
      %c0_17 = arith.constant 0 : index
      %24 = vector.load %arg6[%c0_16, %c0_17] : memref<128x8xf32, #tpu.memory_space<vmem>>, vector<128x8xf32>
      %cst_18 = arith.constant dense<0.000000e+00> : vector<16x8xf32>
      %25 = tpu.matmul %23, %24, %cst_18 {dimension_numbers = #tpu.dot_dimension_numbers<[1], [0], [0], [1], [0, 0, 1, 1], [], []>} : vector<16x128xf32>, vector<128x8xf32>, vector<16x8xf32> -> vector<16x8xf32>
      %c0_19 = arith.constant 0 : index
      %c0_20 = arith.constant 0 : index
      %26 = vector.load %arg7[%c0_19, %c0_20] : memref<1x8xf32, #tpu.memory_space<vmem>>, vector<1x8xf32>
      %27 = vector.broadcast %26 : vector<1x8xf32> to vector<16x8xf32>
      %28 = arith.addf %25, %27 : vector<16x8xf32>
      %cst_21 = arith.constant dense<0xFF800000> : vector<16xf32>
      %29 = vector.multi_reduction <maximumf>, %28, %cst_21 [1] : vector<16x8xf32> to vector<16xf32>
      %30 = vector.shape_cast %29 : vector<16xf32> to vector<16x1xf32>
      %31 = vector.broadcast %30 : vector<16x1xf32> to vector<16x8xf32>
      %32 = arith.subf %28, %31 : vector<16x8xf32>
      %33 = math.exp %32 : vector<16x8xf32>
      %cst_22 = arith.constant dense<0.000000e+00> : vector<16xf32>
      %34 = vector.multi_reduction <add>, %33, %cst_22 [1] : vector<16x8xf32> to vector<16xf32>
      %35 = vector.shape_cast %34 : vector<16xf32> to vector<16x1xf32>
      %36 = math.log %35 : vector<16x1xf32>
      %37 = vector.broadcast %36 : vector<16x1xf32> to vector<16x8xf32>
      %38 = arith.subf %32, %37 : vector<16x8xf32>
      %c0_23 = arith.constant 0 : index
      %c0_24 = arith.constant 0 : index
      %39 = vector.load %arg8[%c0_23, %c0_24] : memref<16x8xf32, #tpu.memory_space<vmem>>, vector<16x8xf32>
      tpu.vector_store %arg8[%c0_23, %c0_24], %38 {strides = array<i32>} : memref<16x8xf32, #tpu.memory_space<vmem>>, vector<16x8xf32>,
    } else {
    }
    return
  }
  func.func @transform_0(%arg0: i32, %arg1: i32) -> (i32, i32, i32) {
    %c0_i32 = arith.constant 0 : i32
    %c0_i32_0 = arith.constant 0 : i32
    return %arg0, %arg1, %c0_i32 : i32, i32, i32
  }
  func.func @transform_1(%arg0: i32, %arg1: i32) -> (i32, i32) {
    %c0_i32 = arith.constant 0 : i32
    %c0_i32_0 = arith.constant 0 : i32
    return %arg0, %c0_i32 : i32, i32
  }
  func.func @transform_2(%arg0: i32, %arg1: i32) -> (i32, i32) {
    %c0_i32 = arith.constant 0 : i32
    %c0_i32_0 = arith.constant 0 : i32
    %c0_i32_1 = arith.constant 0 : i32
    return %c0_i32, %c0_i32_0 : i32, i32
  }
  func.func @transform_3(%arg0: i32, %arg1: i32) -> (i32, i32) {
    %c0_i32 = arith.constant 0 : i32
    %c0_i32_0 = arith.constant 0 : i32
    %c0_i32_1 = arith.constant 0 : i32
    return %c0_i32, %c0_i32_0 : i32, i32
  }
  func.func @transform_4(%arg0: i32, %arg1: i32) -> (i32, i32) {
    %c0_i32 = arith.constant 0 : i32
    %c0_i32_0 = arith.constant 0 : i32
    %c0_i32_1 = arith.constant 0 : i32
    return %c0_i32, %c0_i32_0 : i32, i32
  }
  func.func @transform_5(%arg0: i32, %arg1: i32) -> (i32, i32) {
    %c0_i32 = arith.constant 0 : i32
    %c0_i32_0 = arith.constant 0 : i32
    %c0_i32_1 = arith.constant 0 : i32
    return %c0_i32, %c0_i32_0 : i32, i32
  }
  func.func @transform_6(%arg0: i32, %arg1: i32) -> (i32, i32) {
    %c0_i32 = arith.constant 0 : i32
    %c0_i32_0 = arith.constant 0 : i32
    return %arg0, %c0_i32 : i32, i32
  }
}

</mosaic_0001>

<bundles_post_ra>
// kernel: tpu_custom_call.1
= control target key start
LH: loop header
LB: loop body
LE: loop exit
PB: predicated region body
PF: predicated region fallthrough
CT: control target
= control target key end

     0   :  { %11 = vsyncpa [#allocation4], 0  ;;  %s1789_s0 = inlined_call_operand.hbm [shape: bf16[48,48,128], index: 0, kind: input, shape index: {}]   ;;  %s1790_s1 = inlined_call_operand.vmem [shape: f32[48,1], index: 1, kind: input, shape index: {}]   ;;  %s1791_s2 = inlined_call_operand.vmem [shape: f32[128,128], index: 2, kind: input, shape index: {}]   ;;  %s1792_s3 = inlined_call_operand.vmem [shape: f32[1,128], index: 3, kind: input, shape index: {}]   ;;  %s1793_s4 = inlined_call_operand.vmem [shape: f32[128,8], index: 4, kind: input, shape index: {}]   ;;  %s1794_s5 = inlined_call_operand.vmem [shape: f32[1,8], index: 5, kind: input, shape index: {}]   ;;  %s1795_s6 = inlined_call_operand.vmem [shape: f32[48,8], index: 6, kind: output, shape index: {}]  }
   0x1   :  { %13 = vsyncpa [#allocation4 + $0x1], 0  ;;  %s1429_s21 = smov 0   ;;  %s1431_s22 = smov 0  }
   0x2   :  { %s1433_s23 = smov 0   ;;  %s1435_s24 = smov 0  }
   0x3   :  { %s1437_s25 = smov 0   ;;  %s1439_s26 = smov 0  }
   0x4   :  { %s1441_s27 = smov 0   ;;  %s1443_s28 = smov 0  }
   0x5 LB: > { %1800 = sst [smem:[#allocation9_spill]] %s1377_s26  ;;  %s28_s29 = sadd.s32 1, %s1377_s26  ;;  %s1385_s28 = sphi %s1443_s28, %s19_s28   ;;  %s1381_s27 = sphi %s1441_s27, %s1809_s27   ;;  %s1377_s26 = sphi %s1439_s26, %s1808_s26   ;;  %s1373_s25 = sphi %s1437_s25, %s1807_s25   ;;  %s1369_s24 = sphi %s1435_s24, %s1806_s24   ;;  %s1365_s23 = sphi %s1433_s23, %s1812_s23   ;;  %s1361_s22 = sphi %s1431_s22, %s1811_s22   ;;  %s1357_s21 = sphi %s1429_s21, %s1810_s21  }
   0x6   : > { %1801 = sst [smem:[#allocation10_spill]] %s1381_s27  ;;  %p29_p0 = scmp.ge.s32.totalorder %s28_s29, 3 }
   0x7   : > { %s31_s30 = sadd.s32 1, %s1381_s27  ;;  %s952_s7 = sadd.s32 4294967295, %s1385_s28  }
   0x8   : > { %p47_p1 = scmp.ne.s32.totalorder %s1365_s23, %s1361_s22  ;;  %s1814_s29 = smov (%p29_p0, %s28_s29), 0 }
   0x9   : > { %1802 = sst [smem:[#allocation11_spill]] %s1814_s29  ;;  %s1816_s30 = smov (!%p29_p0, %s31_s30), %s1381_s27 }
   0xa   : > { %s36_s8 = ssub.s32 %s1377_s26, %s1814_s29  ;;  %p48_p2 = scmp.eq.s32.totalorder %s1385_s28, 0 }
   0xb   : > { %p33_p3 = scmp.ge.s32.totalorder %s1816_s30, 3  ;;  %p53_p4 = scmp.ne.s32.totalorder %s1361_s22, %s1357_s21 }
   0xc   : > { %p1479_p5 = por %p48_p2, %p47_p1  ;;  %p54_p6 = scmp.eq.s32.totalorder %s952_s7, 0 }
   0xd   : > { %s1818_s30 = smov (%p33_p3, %s1816_s30), 0  ;;  %s40_s13 = sadd.s32 1, %s1365_s23 }
   0xe   : > { %1804 = sst [smem:[#allocation12_spill]] %s1818_s30  ;;  %p1485_p7 = por %p54_p6, %p53_p4 }
   0xf   : > { %s35_s11 = ssub.s32 %s1381_s27, %s1818_s30  ;;  %p955_p9 = scmp.ge.s32.totalorder %s1385_s28, 9 }
  0x10   : > { %s37_s12 = sor.u32 %s36_s8, %s35_s11 }
  0x11   : > { %p38_p8 = scmp.eq.s32.totalorder %s37_s12, 0  ;;  %221 = sbr.rel (%p955_p9) target bundleno = 39 (0x27), region = 32 }
  0x13   : > { %s1493_s14 = scalar_select %p38_p8, %s1365_s23, %s40_s13  }
  0x18   : > { %s225_s15 = sand.u32 1, %s1365_s23   ;;  %s958_s16 = sshll.u32 %s1377_s26, 1 }
  0x19   : > { %s956_s17 = sshll.u32 %s225_s15, 7  ;;  %s1225_s18 = smul.u32 96, %s1381_s27 }
  0x1a   : > { %s1226_s19 = scalar_select %p1479_p5, [#allocation0], [#allocation7] }
  0x1b   : > { %s236_s20 = sadd.s32 %s1225_s18, %s958_s16  ;;  %s229_s21 = scalar_lea.vmem [#allocation3], %s956_s17 }
  0x1c   : > { %s251_s7 = sshll.u32 %s229_s21, 4  ;;  %s960_s8 = sshll.u32 %s236_s20, 6  ;;  %s252_s7 = int_to_ptr.vmem [resolvable:$true] %s251_s7 }
  0x1d   : > { %s243_s11 = sld [smem:[%s1226_s19]]   ;;  %s238_s30 = scalar_lea.hbm %s1789_s0, %s960_s8 }
  0x1e   : > { %s1387_s29 = smov 384   ;;  %s1388_s27 = smov 128  }
  0x1f   : > { %1227 = sst [smem:[#allocation6]] (%p1479_p5), %s1387_s29  ;;  %s1389_s26 = smov 2  }
  0x20   : > { %1228 = sst [smem:[#allocation6 + $0x1]] (%p1479_p5), %s1388_s27  ;;  %s1390_s17 = smov 64  }
  0x21   : > { %1229 = sst [smem:[#allocation6 + $0x2]] (%p1479_p5), %s1389_s26  ;;  %s1391_s19 = smov 4  }
  0x22   : > { %1230 = sst [smem:[#allocation6 + $0x3]] (%p1479_p5), %s1390_s17  ;;  %s226_s20 = scalar_lea.sflag [#allocation4], %s225_s15 }
  0x23   : > { %s961_s16 = sshll.u32 %s243_s11, 26  ;;  %1231 = sst [smem:[#allocation6 + $0x4]] (%p1479_p5), %s1390_s17 }
  0x24   : > { %s962_s18 = sadd.s32 134217728, %s961_s16  ;;  %1232 = sst [smem:[#allocation6 + $0x5]] (%p1479_p5), %s1391_s19 }
  0x25   : > { %s1392_s21 = smov [#allocation5]  }
  0x26   : > { %1233 = dma.general (%p1479_p5), %s238_s30, 2048, %s252_s7, %s226_s20, %s1392_s21, [#allocation6], %s962_s18, 0  }
  0x27 PF: > { %p963_p10 = scmp.ge.s32.totalorder %s1385_s28, 1  ;;  %p281_p11 = scmp.lt.s32.totalorder %s1385_s28, 10 }
  0x29   : > { %p282_p12 = pnand %p963_p10, %p281_p11 }
  0x2a   : > { %s287_s26 = sand.u32 (!%p282_p12), 1, %s1361_s22  }
  0x2b   : > { %285 = sbr.rel (%p282_p12) target bundleno = 901 (0x385), region = 44  ;;  %s964_s27 = sshll.u32 (!%p282_p12), %s287_s26, 7 }
  0x2c   : > { %s288_s29 = scalar_lea.sflag (!%p282_p12), [#allocation4], %s287_s26  ;;  %s1521_s8 = scalar_lea.vmem (!%p282_p12), [#allocation3], %s964_s27 }
  0x32   : > { %1352 = dma.done.wait (%p1485_p7), %s288_s29, 2048  }
  0x33   : > { %1354 = vsyncadd (%p1485_p7), %s288_s29, 4294965248  ;;  %s965_s30 = sshll.u32 %s1373_s25, 1  ;;  %v977_v0 = vld [vmem:[%s1521_s8] sm:$0xff]   ;;  %v1040_v1 = vld [vmem:[%s1521_s8 + $0x8] sm:$0xff]   ;;  %p969_p0 = scmp.ne.s32.totalorder %s1369_s24, 0 }
  0x34   : > { %p328_p13 = scmp.lt.s32.totalorder %s965_s30, 5  ;;  %v1041_v2 = vld [vmem:[%s1521_s8 + $0x10] sm:$0xff]   ;;  %v978_v3 = vunpack.c.l.bf16 %v977_v0  ;;  %v979_v4 = vunpack.c.h.bf16 %v977_v0  ;;  %v982_v5 = vunpack.c.l.bf16 %v1040_v1  ;;  %v983_v6 = vunpack.c.h.bf16 %v1040_v1  ;;  %v1042_v7 = vld [vmem:[%s1521_s8 + $0x18] sm:$0xff]   ;;  %v1043_v8 = vld [vmem:[%s1521_s8 + $0x20] sm:$0xff]  }
  0x35   : > { %v1044_v9 = vld [vmem:[%s1521_s8 + $0x28] sm:$0xff]   ;;  %v986_v10 = vunpack.c.l.bf16 %v1041_v2  ;;  %v987_v11 = vunpack.c.h.bf16 %v1041_v2  ;;  %v990_v12 = vunpack.c.l.bf16 %v1042_v7  ;;  %v991_v13 = vunpack.c.h.bf16 %v1042_v7  ;;  %v1045_v14 = vld [vmem:[%s1521_s8 + $0x30] sm:$0xff]   ;;  %v1046_v15 = vld [vmem:[%s1521_s8 + $0x38] sm:$0xff]  }
  0x36   : > { %s1820_s30 = smov (!%p328_p13, %s965_s30), 5  ;;  %v1547_v16 = vld [vmem:[%s1521_s8 + $0x40] sm:$0xff]   ;;  %v994_v17 = vunpack.c.l.bf16 %v1043_v8  ;;  %v995_v18 = vunpack.c.h.bf16 %v1043_v8  ;;  %v998_v19 = vunpack.c.l.bf16 %v1044_v9  ;;  %v999_v20 = vunpack.c.h.bf16 %v1044_v9  ;;  %v1550_v21 = vld [vmem:[%s1521_s8 + $0x48] sm:$0xff]   ;;  %v1553_v22 = vld [vmem:[%s1521_s8 + $0x50] sm:$0xff]  }
  0x37   : > { %s966_s9 = sshll.u32 %s1820_s30, 3  ;;  %v1556_v23 = vld [vmem:[%s1521_s8 + $0x58] sm:$0xff]   ;;  %v1002_v24 = vunpack.c.l.bf16 %v1045_v14  ;;  %v1003_v25 = vunpack.c.h.bf16 %v1045_v14  ;;  %v1006_v26 = vunpack.c.l.bf16 %v1046_v15  ;;  %v1007_v27 = vunpack.c.h.bf16 %v1046_v15  ;;  %v1559_v28 = vld [vmem:[%s1521_s8 + $0x60] sm:$0xff]   ;;  %v1562_v29 = vld [vmem:[%s1521_s8 + $0x68] sm:$0xff]  }
  0x38   : > { %s1531_s11 = scalar_lea.vmem %s1790_s1, %s966_s9  ;;  %s1536_s10 = scalar_lea.vmem %s1795_s6, %s966_s9  ;;  %v1010_v30 = vunpack.c.l.bf16 %v1547_v16  ;;  %v1011_v31 = vunpack.c.h.bf16 %v1547_v16  ;;  %v1014_v32 = vunpack.c.l.bf16 %v1550_v21  ;;  %v1015_v33 = vunpack.c.h.bf16 %v1550_v21  ;;  %v1569_v34 = vld [vmem:[%s1521_s8 + $0x70] sm:$0xff]   ;;  %v1572_v35 = vld [vmem:[%s1521_s8 + $0x78] sm:$0xff]  }
  0x39   : > { %v1018_v36 = vunpack.c.l.bf16 %v1553_v22  ;;  %v1019_v37 = vunpack.c.h.bf16 %v1553_v22  ;;  %v1022_v38 = vunpack.c.l.bf16 %v1556_v23  ;;  %v1023_v39 = vunpack.c.h.bf16 %v1556_v23 }
  0x3a   : > { %v1026_v40 = vunpack.c.l.bf16 %v1559_v28  ;;  %v1027_v41 = vunpack.c.h.bf16 %v1559_v28  ;;  %v1030_v42 = vunpack.c.l.bf16 %v1562_v29  ;;  %v1031_v43 = vunpack.c.h.bf16 %v1562_v29 }
  0x3b   : > { %v1034_v44 = vunpack.c.l.bf16 %v1569_v34  ;;  %v1035_v45 = vunpack.c.h.bf16 %v1569_v34  ;;  %v1038_v46 = vunpack.c.l.bf16 %v1572_v35  ;;  %v1039_v47 = vunpack.c.h.bf16 %v1572_v35 }
  0x3c   : > { %v403_v48 = vadd.f32 %v979_v4, %v978_v3  ;;  %v410_v49 = vadd.f32 %v983_v6, %v982_v5  ;;  %v417_v50 = vadd.f32 %v987_v11, %v986_v10  ;;  %v424_v51 = vadd.f32 %v991_v13, %v990_v12 }
  0x3d   : > { %v431_v52 = vadd.f32 %v995_v18, %v994_v17  ;;  %v438_v53 = vadd.f32 %v999_v20, %v998_v19  ;;  %v445_v54 = vadd.f32 %v1003_v25, %v1002_v24  ;;  %v452_v55 = vadd.f32 %v1007_v27, %v1006_v26 }
  0x3e   : > { %v404_v56 = vrot.slane %v403_v48, 4  ;;  %v411_v57 = vrot.slane %v410_v49, 4  ;;  %v418_v58 = vrot.slane %v417_v50, 4  ;;  %v425_v59 = vrot.slane %v424_v51, 4 }
  0x3f   : > { %v432_v60 = vrot.slane %v431_v52, 4  ;;  %v439_v61 = vrot.slane %v438_v53, 4  ;;  %v446_v62 = vrot.slane %v445_v54, 4  ;;  %v453_v63 = vrot.slane %v452_v55, 4 }
  0x40   : > { %v405_v0 = vadd.f32 %v404_v56, %v403_v48  ;;  %v412_v1 = vadd.f32 %v411_v57, %v410_v49  ;;  %v419_v2 = vadd.f32 %v418_v58, %v417_v50  ;;  %v426_v7 = vadd.f32 %v425_v59, %v424_v51 }
  0x41   : > { %v433_v3 = vadd.f32 %v432_v60, %v431_v52  ;;  %v440_v4 = vadd.f32 %v439_v61, %v438_v53  ;;  %v447_v5 = vadd.f32 %v446_v62, %v445_v54  ;;  %v454_v6 = vadd.f32 %v453_v63, %v452_v55 }
  0x42   : > { %v406_v8 = vrot.slane %v405_v0, 2  ;;  %v413_v9 = vrot.slane %v412_v1, 2  ;;  %v420_v10 = vrot.slane %v419_v2, 2  ;;  %v427_v11 = vrot.slane %v426_v7, 2 }
  0x43   : > { %v434_v12 = vrot.slane %v433_v3, 2  ;;  %v441_v13 = vrot.slane %v440_v4, 2  ;;  %v448_v14 = vrot.slane %v447_v5, 2  ;;  %v455_v15 = vrot.slane %v454_v6, 2 }
  0x44   : > { %v407_v17 = vadd.f32 %v406_v8, %v405_v0  ;;  %v414_v18 = vadd.f32 %v413_v9, %v412_v1  ;;  %v421_v19 = vadd.f32 %v420_v10, %v419_v2  ;;  %v428_v20 = vadd.f32 %v427_v11, %v426_v7 }
  0x45   : > { %v435_v24 = vadd.f32 %v434_v12, %v433_v3  ;;  %v442_v25 = vadd.f32 %v441_v13, %v440_v4  ;;  %v449_v26 = vadd.f32 %v448_v14, %v447_v5  ;;  %v456_v27 = vadd.f32 %v455_v15, %v454_v6 }
  0x46   : > { %v408_v48 = vrot.slane %v407_v17, 1  ;;  %v415_v49 = vrot.slane %v414_v18, 1  ;;  %v422_v50 = vrot.slane %v421_v19, 1  ;;  %v429_v51 = vrot.slane %v428_v20, 1 }
  0x47   : > { %v436_v52 = vrot.slane %v435_v24, 1  ;;  %v443_v53 = vrot.slane %v442_v25, 1  ;;  %v450_v54 = vrot.slane %v449_v26, 1  ;;  %v457_v55 = vrot.slane %v456_v27, 1 }
  0x48   : > { %v1586_v56 = vadd.f32 %v408_v48, %v407_v17  ;;  %v1588_v57 = vadd.f32 %v415_v49, %v414_v18  ;;  %v1590_v58 = vadd.f32 %v422_v50, %v421_v19  ;;  %v1592_v59 = vadd.f32 %v429_v51, %v428_v20 }
  0x49   : > { %v1594_v60 = vadd.f32 %v436_v52, %v435_v24  ;;  %v1596_v61 = vadd.f32 %v443_v53, %v442_v25  ;;  %v1598_v62 = vadd.f32 %v450_v54, %v449_v26  ;;  %v1600_v63 = vadd.f32 %v457_v55, %v456_v27 }
  0x4a   : > { %v459_v0 = vadd.f32 %v1011_v31, %v1010_v30  ;;  %v466_v1 = vadd.f32 %v1015_v33, %v1014_v32  ;;  %v473_v2 = vadd.f32 %v1019_v37, %v1018_v36  ;;  %v480_v7 = vadd.f32 %v1023_v39, %v1022_v38 }
  0x4b   : > { %v487_v16 = vadd.f32 %v1027_v41, %v1026_v40  ;;  %v494_v21 = vadd.f32 %v1031_v43, %v1030_v42  ;;  %v501_v22 = vadd.f32 %v1035_v45, %v1034_v44  ;;  %v508_v23 = vadd.f32 %v1039_v47, %v1038_v46 }
  0x4c   : > { %v460_v30 = vrot.slane %v459_v0, 4  ;;  %v467_v31 = vrot.slane %v466_v1, 4  ;;  %v474_v32 = vrot.slane %v473_v2, 4  ;;  %v481_v28 = vrot.slane %v480_v7, 4 }
  0x4d   : > { %v488_v33 = vrot.slane %v487_v16, 4  ;;  %v495_v36 = vrot.slane %v494_v21, 4  ;;  %v502_v37 = vrot.slane %v501_v22, 4  ;;  %v509_v38 = vrot.slane %v508_v23, 4 }
  0x4e   : > { %v461_v29 = vadd.f32 %v460_v30, %v459_v0  ;;  %v468_v39 = vadd.f32 %v467_v31, %v466_v1  ;;  %v475_v40 = vadd.f32 %v474_v32, %v473_v2  ;;  %v482_v41 = vadd.f32 %v481_v28, %v480_v7 }
  0x4f   : > { %v489_v42 = vadd.f32 %v488_v33, %v487_v16  ;;  %v496_v34 = vadd.f32 %v495_v36, %v494_v21  ;;  %v503_v43 = vadd.f32 %v502_v37, %v501_v22  ;;  %v510_v44 = vadd.f32 %v509_v38, %v508_v23 }
  0x50   : > { %v462_v45 = vrot.slane %v461_v29, 2  ;;  %v469_v3 = vrot.slane %v468_v39, 2  ;;  %v476_v35 = vrot.slane %v475_v40, 2  ;;  %v483_v46 = vrot.slane %v482_v41, 2 }
  0x51   : > { %v490_v47 = vrot.slane %v489_v42, 2  ;;  %v497_v4 = vrot.slane %v496_v34, 2  ;;  %v504_v5 = vrot.slane %v503_v43, 2  ;;  %v511_v6 = vrot.slane %v510_v44, 2  ;;  %518 = sbr.rel (%p969_p0) target bundleno = 97 (0x61), region = 52 }
  0x52   : > { %v463_v8 = vadd.f32 %v462_v45, %v461_v29  ;;  %v470_v9 = vadd.f32 %v469_v3, %v468_v39  ;;  %v477_v10 = vadd.f32 %v476_v35, %v475_v40  ;;  %v484_v11 = vadd.f32 %v483_v46, %v482_v41 }
  0x53   : > { %v491_v12 = vadd.f32 %v490_v47, %v489_v42  ;;  %v498_v13 = vadd.f32 %v497_v4, %v496_v34  ;;  %v505_v14 = vadd.f32 %v504_v5, %v503_v43  ;;  %v512_v15 = vadd.f32 %v511_v6, %v510_v44 }
  0x54   : > { %v464_v17 = vrot.slane %v463_v8, 1  ;;  %v471_v18 = vrot.slane %v470_v9, 1  ;;  %v478_v19 = vrot.slane %v477_v10, 1  ;;  %v485_v20 = vrot.slane %v484_v11, 1 }
  0x55   : > { %v492_v24 = vrot.slane %v491_v12, 1  ;;  %v499_v25 = vrot.slane %v498_v13, 1  ;;  %v506_v26 = vrot.slane %v505_v14, 1  ;;  %v513_v27 = vrot.slane %v512_v15, 1 }
  0x56   : > { %v465_v48 = vadd.f32 %v464_v17, %v463_v8  ;;  %v472_v49 = vadd.f32 %v471_v18, %v470_v9  ;;  %v479_v50 = vadd.f32 %v478_v19, %v477_v10  ;;  %v486_v51 = vadd.f32 %v485_v20, %v484_v11 }
  0x57   : > { %v493_v52 = vadd.f32 %v492_v24, %v491_v12  ;;  %v500_v53 = vadd.f32 %v499_v25, %v498_v13  ;;  %v507_v54 = vadd.f32 %v506_v26, %v505_v14  ;;  %v514_v55 = vadd.f32 %v513_v27, %v512_v15 }
  0x58   : > { %vm535_vm0 = vcmask 1041409   ;;  %vm537_vm1 = vcmask 1042434   ;;  %vm539_vm2 = vcmask 1043459   ;;  %vm541_vm3 = vcmask 1044484  }
  0x59   : > { %v536_v0 = vsel %vm535_vm0, %v1588_v57, %v1586_v56  ;;  %vm543_vm4 = vcmask 1045509   ;;  %v549_v2 = vsel %vm535_vm0, %v472_v49, %v465_v48  ;;  %vm545_vm5 = vcmask 1046534  }
  0x5a   : > { %v538_v1 = vsel %vm537_vm1, %v1590_v58, %v536_v0  ;;  %v550_v16 = vsel %vm537_vm1, %v479_v50, %v549_v2  ;;  %vm547_vm6 = vcmask 1047559  }
  0x5b   : > { %v540_v7 = vsel %vm539_vm2, %v1592_v59, %v538_v1  ;;  %v551_v22 = vsel %vm539_vm2, %v486_v51, %v550_v16 }
  0x5c   : > { %v542_v21 = vsel %vm541_vm3, %v1594_v60, %v540_v7  ;;  %v552_v30 = vsel %vm541_vm3, %v493_v52, %v551_v22 }
  0x5d   : > { %v544_v23 = vsel %vm543_vm4, %v1596_v61, %v542_v21  ;;  %v553_v32 = vsel %vm543_vm4, %v500_v53, %v552_v30 }
  0x5e   : > { %v546_v31 = vsel %vm545_vm5, %v1598_v62, %v544_v23  ;;  %v554_v33 = vsel %vm545_vm5, %v507_v54, %v553_v32 }
  0x5f   : > { %v548_v28 = vsel %vm547_vm6, %v1600_v63, %v546_v31  ;;  %v555_v36 = vsel %vm547_vm6, %v514_v55, %v554_v33 }
  0x60   : > { %558 = vst [vmem:[#allocation2] sm:$0xff] %v548_v28  ;;  %559 = vst [vmem:[#allocation2 + $0x8] sm:$0xff] %v555_v36 }
  0x61 PF: > { %p970_p1 = scmp.le.s32.totalorder %s1369_s24, 0 }
  0x62   : > { %vm582_vm7 = vcmask (!%p970_p1), 1041409   ;;  %vm584_vm8 = vcmask (!%p970_p1), 1042434   ;;  %vm586_vm9 = vcmask (!%p970_p1), 1043459   ;;  %vm588_vm10 = vcmask (!%p970_p1), 1044484  }
  0x63   : > { %563 = sbr.rel (%p970_p1) target bundleno = 109 (0x6d), region = 56  ;;  %v583_v37 = vsel (!%p970_p1), %vm582_vm7, %v1588_v57, %v1586_v56  ;;  %vm590_vm11 = vcmask (!%p970_p1), 1045509   ;;  %v596_v29 = vsel (!%p970_p1), %vm582_vm7, %v472_v49, %v465_v48  ;;  %vm592_vm12 = vcmask (!%p970_p1), 1046534  }
  0x64   : > { %v585_v38 = vsel (!%p970_p1), %vm584_vm8, %v1590_v58, %v583_v37  ;;  %v597_v40 = vsel (!%p970_p1), %vm584_vm8, %v479_v50, %v596_v29  ;;  %vm594_vm13 = vcmask (!%p970_p1), 1047559  }
  0x65   : > { %v587_v39 = vsel (!%p970_p1), %vm586_vm9, %v1592_v59, %v585_v38  ;;  %v598_v42 = vsel (!%p970_p1), %vm586_vm9, %v486_v51, %v597_v40 }
  0x66   : > { %v589_v41 = vsel (!%p970_p1), %vm588_vm10, %v1594_v60, %v587_v39  ;;  %v599_v44 = vsel (!%p970_p1), %vm588_vm10, %v493_v52, %v598_v42 }
  0x67   : > { %v564_v34 = vld [vmem:[#allocation2] sm:$0xff] (!%p970_p1)  ;;  %v591_v43 = vsel (!%p970_p1), %vm590_vm11, %v1596_v61, %v589_v41  ;;  %v565_v56 = vld [vmem:[#allocation2 + $0x8] sm:$0xff] (!%p970_p1)  ;;  %v600_v57 = vsel (!%p970_p1), %vm590_vm11, %v500_v53, %v599_v44 }
  0x68   : > { %v593_v45 = vsel (!%p970_p1), %vm592_vm12, %v1598_v62, %v591_v43  ;;  %v601_v3 = vsel (!%p970_p1), %vm592_vm12, %v507_v54, %v600_v57 }
  0x69   : > { %v595_v58 = vsel (!%p970_p1), %vm594_vm13, %v1600_v63, %v593_v45  ;;  %v602_v46 = vsel (!%p970_p1), %vm594_vm13, %v514_v55, %v601_v3 }
  0x6a   : > { %v605_v35 = vadd.f32 %v595_v58, %v564_v34  ;;  %v606_v59 = vadd.f32 %v602_v46, %v565_v56 }
  0x6c   : > { %607 = vst [vmem:[#allocation2] sm:$0xff] %v605_v35  ;;  %608 = vst [vmem:[#allocation2 + $0x8] sm:$0xff] %v606_v59 }
  0x6d PF: > { %p971_p2 = scmp.ne.s32.totalorder %s1369_s24, 2 }
  0x6e   : > { %v619_v60 = vld [vmem:[%s1791_s2] sm:$0xff] (!%p971_p2)  ;;  %v620_v61 = vld [vmem:[%s1791_s2 + $0x8] sm:$0xff] (!%p971_p2)  ;;  %v621_v62 = vld [vmem:[%s1791_s2 + $0x10] sm:$0xff] (!%p971_p2)  ;;  %v1393_v4 = vmov (!%p971_p2), 0   ;;  %vm831_vm14 = vcmask (!%p971_p2), 64512  }
  0x6f   : > { %612 = sbr.rel (%p971_p2) target bundleno = 901 (0x385), region = 60  ;;  %v1161_v63 = vpack.c.bf16 (!%p971_p2), %v620_v61, %v619_v60  ;;  %v622_v47 = vld [vmem:[%s1791_s2 + $0x18] sm:$0xff] (!%p971_p2)  ;;  %1306 = vset.pattern.permute.xlu0 (!%p971_p2), %v1393_v4  ;;  %v623_v6 = vld [vmem:[%s1791_s2 + $0x20] sm:$0xff] (!%p971_p2)  ;;  %v624_v8 = vld [vmem:[%s1791_s2 + $0x28] sm:$0xff] (!%p971_p2) }
  0x70   : > { %v1165_v5 = vpack.c.bf16 (!%p971_p2), %v622_v47, %v621_v62  ;;  %v1169_v9 = vpack.c.bf16 (!%p971_p2), %v624_v8, %v623_v6  ;;  %v625_v10 = vld [vmem:[%s1791_s2 + $0x30] sm:$0xff] (!%p971_p2)  ;;  %v626_v11 = vld [vmem:[%s1791_s2 + $0x38] sm:$0xff] (!%p971_p2)  ;;  %v613_v13 = vld [vmem:[%s1531_s11] sm:$0xff] (!%p971_p2) }
  0x71   : > { %1162 = vmatprep.subr.bf16.mxu0 (!%p971_p2), %v1161_v63  ;;  %v614_v14 = vld [vmem:[%s1531_s11 + $0x8] sm:$0xff] (!%p971_p2)  ;;  %v733_v15 = vld [vmem:[%s1793_s4] sm:$0xff] (!%p971_p2)  ;;  %1307 = vrcp.f32 (!%p971_p2), %v613_v13  ;;  %v735_v18 = vld [vmem:[%s1793_s4 + $0x10] sm:$0xff] (!%p971_p2)  ;;  %v1173_v25 = vpack.c.bf16 (!%p971_p2), %v626_v11, %v625_v10 }
  0x72   : > { %1164 = vmatpush3.bf16.msra.mxu0 (!%p971_p2), %v1161_v63  ;;  %v734_v17 = vld [vmem:[%s1793_s4 + $0x8] sm:$0xff] (!%p971_p2)  ;;  %v736_v19 = vld [vmem:[%s1793_s4 + $0x18] sm:$0xff] (!%p971_p2)  ;;  %1309 = vrcp.f32 (!%p971_p2), %v614_v14  ;;  %v737_v26 = vld [vmem:[%s1793_s4 + $0x20] sm:$0xff] (!%p971_p2) }
  0x73   : > { %1166 = vmatprep.subr.bf16.mxu0 (!%p971_p2), %v1165_v5  ;;  %v617_v12 = vld [vmem:[#allocation2] sm:$0xff] (!%p971_p2)  ;;  %v1193_v20 = vpack.c.bf16 (!%p971_p2), %v734_v17, %v733_v15  ;;  %v1197_v24 = vpack.c.bf16 (!%p971_p2), %v736_v19, %v735_v18  ;;  %v738_v27 = vld [vmem:[%s1793_s4 + $0x28] sm:$0xff] (!%p971_p2)  ;;  %v739_v52 = vld [vmem:[%s1793_s4 + $0x30] sm:$0xff] (!%p971_p2) }
  0x74   : > { %1123 = vmatprep.mubr.f32.mxu0 (!%p971_p2), %v617_v12  ;;  %v627_v48 = vld [vmem:[%s1791_s2 + $0x40] sm:$0xff] (!%p971_p2)  ;;  %v628_v49 = vld [vmem:[%s1791_s2 + $0x48] sm:$0xff] (!%p971_p2)  ;;  %v1201_v50 = vpack.c.bf16 (!%p971_p2), %v738_v27, %v737_v26  ;;  %v740_v53 = vld [vmem:[%s1793_s4 + $0x38] sm:$0xff] (!%p971_p2) }
  0x75   : > { %1194 = vmatprep.subr.bf16.mxu1 (!%p971_p2), %v1193_v20  ;;  %v1177_v51 = vpack.c.bf16 (!%p971_p2), %v628_v49, %v627_v48  ;;  %v629_v54 = vld [vmem:[%s1791_s2 + $0x50] sm:$0xff] (!%p971_p2)  ;;  %v630_v55 = vld [vmem:[%s1791_s2 + $0x58] sm:$0xff] (!%p971_p2)  ;;  %v1205_v0 = vpack.c.bf16 (!%p971_p2), %v740_v53, %v739_v52  ;;  %v741_v7 = vld [vmem:[%s1793_s4 + $0x40] sm:$0xff] (!%p971_p2) }
  0x76   : > { %1168 = vmatpush3.bf16.msra.mxu0 %v1165_v5  ;;  %1196 = vmatpush3.bf16.msra.mxu1 %v1193_v20  ;;  %v1181_v2 = vpack.c.bf16 %v630_v55, %v629_v54  ;;  %v742_v16 = vld [vmem:[%s1793_s4 + $0x48] sm:$0xff]  ;;  %v631_v21 = vld [vmem:[%s1791_s2 + $0x60] sm:$0xff]  ;;  %v743_v32 = vld [vmem:[%s1793_s4 + $0x50] sm:$0xff] }
  0x77   : > { %1170 = vmatprep.subr.bf16.mxu0 %v1169_v9  ;;  %1198 = vmatprep.subr.bf16.mxu1 %v1197_v24  ;;  %v632_v22 = vld [vmem:[%s1791_s2 + $0x68] sm:$0xff]  ;;  %v1209_v30 = vpack.c.bf16 %v742_v16, %v741_v7  ;;  %v744_v28 = vld [vmem:[%s1793_s4 + $0x58] sm:$0xff]  ;;  %v633_v33 = vld [vmem:[%s1791_s2 + $0x70] sm:$0xff] }
  0x78   : > { %v1185_v31 = vpack.c.bf16 %v632_v22, %v631_v21  ;;  %v634_v36 = vld [vmem:[%s1791_s2 + $0x78] sm:$0xff]  ;;  %v1213_v37 = vpack.c.bf16 %v744_v28, %v743_v32  ;;  %v618_v29 = vld [vmem:[#allocation2 + $0x8] sm:$0xff]  ;;  %v745_v39 = vld [vmem:[%s1793_s4 + $0x60] sm:$0xff] }
  0x79   : > { %v1189_v38 = vpack.c.bf16 %v634_v36, %v633_v33  ;;  %v746_v40 = vld [vmem:[%s1793_s4 + $0x68] sm:$0xff]  ;;  %v747_v42 = vld [vmem:[%s1793_s4 + $0x70] sm:$0xff]  ;;  %v748_v34 = vld [vmem:[%s1793_s4 + $0x78] sm:$0xff] }
  0x7a   : > { %1172 = vmatpush3.bf16.msra.mxu0 %v1169_v9  ;;  %1200 = vmatpush3.bf16.msra.mxu1 %v1197_v24  ;;  %v1217_v41 = vpack.c.bf16 %v746_v40, %v745_v39  ;;  %v1221_v43 = vpack.c.bf16 %v748_v34, %v747_v42  ;;  %v972_v57 = vld [vmem:[%s1792_s3] ss:$0 sm:$0xff] }
  0x7b   : > { %1174 = vmatprep.subr.bf16.mxu0 %v1173_v25  ;;  %1202 = vmatprep.subr.bf16.mxu1 %v1201_v50  ;;  %v1308_v1 = vpop.eup %1307  ;;  %v973_v62 = vld [vmem:[%s1794_s5] ss:$0 sm:$0xff] }
  0x7c   : > { %712 = vperm.xlu0 %1306, %v1308_v1   ;;  %v1310_v23 = vpop.eup %1309 }
  0x7e   : > { %1176 = vmatpush3.bf16.msra.mxu0 %v1173_v25  ;;  %1204 = vmatpush3.bf16.msra.mxu1 %v1201_v50 }
  0x7f   : > { %1178 = vmatprep.subr.bf16.mxu0 %v1177_v51  ;;  %1206 = vmatprep.subr.bf16.mxu1 %v1205_v0 }
  0x80   : > { %717 = vperm.xlu0 %1306, %v1310_v23  }
  0x82   : > { %1180 = vmatpush3.bf16.msra.mxu0 %v1177_v51  ;;  %1208 = vmatpush3.bf16.msra.mxu1 %v1205_v0 }
  0x83   : > { %1182 = vmatprep.subr.bf16.mxu0 %v1181_v2  ;;  %1210 = vmatprep.subr.bf16.mxu1 %v1209_v30 }
  0x86   : > { %1184 = vmatpush3.bf16.msra.mxu0 %v1181_v2  ;;  %1212 = vmatpush3.bf16.msra.mxu1 %v1209_v30 }
  0x87   : > { %1186 = vmatprep.subr.bf16.mxu0 %v1185_v31  ;;  %1214 = vmatprep.subr.bf16.mxu1 %v1213_v37 }
  0x8a   : > { %1188 = vmatpush3.bf16.msra.mxu0 %v1185_v31  ;;  %1216 = vmatpush3.bf16.msra.mxu1 %v1213_v37 }
  0x8b   : > { %1190 = vmatprep.subr.bf16.mxu0 %v1189_v38  ;;  %1218 = vmatprep.subr.bf16.mxu1 %v1217_v41 }
  0x8e   : > { %1192 = vmatpush3.bf16.msra.mxu0 %v1189_v38  ;;  %1220 = vmatpush3.bf16.msra.mxu1 %v1217_v41 }
  0x8f   : > { %1222 = vmatprep.subr.bf16.mxu1 %v1221_v43 }
  0x91   : > { %1124 = vmatmul.mubr.f32.vlgmr.msra.gmra.mrb[0].mxu0 %v618_v29 }
  0x92   : > { %1224 = vmatpush3.bf16.msra.mxu1 %v1221_v43 }
  0xfb   : > { %v713_v44 = vpop.permute.xlu0 %712 }
  0xff   : > { %v718_v45 = vpop.permute.xlu0 %717 }
 0x164   : > { %v1125_v56 = vpop.f32.mrb[0].mxu0 }
 0x165   : > { %v721_v58 = vmul.f32 %v1125_v56, %v718_v45  ;;  %v701_v3 = vpop.f32.mrb[1].mxu0 }
 0x166   : > { %v720_v35 = vmul.f32 %v713_v44, %v701_v3 }
 0x167   : > { %v730_v46 = vadd.f32 %v972_v57, %v721_v58 }
 0x168   : > { %v729_v59 = vadd.f32 %v972_v57, %v720_v35 }
 0x169   : > { %v732_v61 = vmax.f32 %v730_v46, 0.0 }
 0x16a   : > { %v731_v60 = vmax.f32 %v729_v59, 0.0 }
 0x16c   : > { %1158 = vmatprep.mubr.f32.mxu1 %v731_v60 }
 0x16d   : > { %1159 = vmatmul.mubr.f32.vlgmr.msra.gmra.mrb[0].mxu1 %v732_v61 }
 0x240   : > { %v1160_v63 = vpop.f32.mrb[0].mxu1 }
 0x241   : > { %v822_v47 = vpop.f32.mrb[1].mxu1  ;;  %v828_v5 = vadd.f32 %v1160_v63, %v973_v62 }
 0x242   : > { %v823_v4 = vadd.f32 %v973_v62, %v822_v47 }
 0x243   : > { %v835_v8 = vsel %vm831_vm14, %v828_v5, -inf }
 0x244   : > { %v832_v6 = vsel %vm831_vm14, %v823_v4, -inf }
 0x245   : > { %833 = vmax.xlane.f32.xlu1 %v832_v6 }
 0x249   : > { %836 = vmax.xlane.f32.xlu1 %v835_v8 }
 0x2d2   : > { %v834_v9 = vpop.xlane.xlu1 %833 }
 0x2d3   : > { %v838_v10 = vsub.f32 %v823_v4, %v834_v9 }
 0x2d5   : > { %v840_v11 = vmul.f32 1.442695, %v838_v10 }
 0x2d6   : > { %v837_v12 = vpop.xlane.xlu1 %836 }
 0x2d7   : > { %1311 = vpow2.f32 %v840_v11  ;;  %v839_v13 = vsub.f32 %v828_v5, %v837_v12 }
 0x2d9   : > { %v842_v14 = vmul.f32 1.442695, %v839_v13 }
 0x2db   : > { %1313 = vpow2.f32 %v842_v14 }
 0x2e1   : > { %v1312_v15 = vpop.eup %1311 }
 0x2e2   : > { %v844_v17 = vsel %vm831_vm14, %v1312_v15, 0.0 }
 0x2e3   : > { %845 = vadd.xlane.f32.xlu0 %v844_v17 }
 0x2e5   : > { %v1314_v18 = vpop.eup %1313 }
 0x2e6   : > { %v847_v19 = vsel %vm831_vm14, %v1314_v18, 0.0 }
 0x2e7   : > { %848 = vadd.xlane.f32.xlu1 %v847_v19 }
 0x370   : > { %v846_v20 = vpop.xlane.xlu0 %845 }
 0x371   : > { %1315 = vlog2.f32 %v846_v20 }
 0x374   : > { %v849_v24 = vpop.xlane.xlu1 %848 }
 0x375   : > { %1317 = vlog2.f32 %v849_v24 }
 0x37b   : > { %v1316_v25 = vpop.eup %1315 }
 0x37c   : > { %v851_v26 = vmul.f32 0.6931472, %v1316_v25 }
 0x37e   : > { %v854_v27 = vsub.f32 %v838_v10, %v851_v26 }
 0x37f   : > { %v1318_v48 = vpop.eup %1317 }
 0x380   : > { %856 = vst.msk [vmem:[%s1536_s10] sm:$0xff] %vm831_vm14, %v854_v27  ;;  %v853_v49 = vmul.f32 0.6931472, %v1318_v48 }
 0x382   : > { %v855_v50 = vsub.f32 %v839_v13, %v853_v49 }
 0x384   : > { %857 = vst.msk [vmem:[%s1536_s10 + $0x8] sm:$0xff] %vm831_vm14, %v855_v50 }
 0x385 PF: > { %s19_s28 = sadd.s32 1, %s1385_s28   ;;  %s1806_s24 = sld [smem:[#allocation9_spill]] }
 0x386   : > { %p16_p3 = scmp.ge.s32.totalorder %s19_s28, 11   ;;  %s1807_s25 = sld [smem:[#allocation10_spill]] }
 0x387   : > { %s1808_s26 = sld [smem:[#allocation11_spill]]  ;;  %s1809_s27 = sld [smem:[#allocation12_spill]] }
 0x388   : > { %s1810_s21 = smov %s1361_s22  ;;  %s1811_s22 = smov %s1365_s23 }
 0x389   : > { %s1812_s23 = smov %s1493_s14  ;;  %18 = sbr.rel (!%p16_p3) target bundleno = 5 (0x5), region = 104 }
 0x390   :  { %880 = vsyncpa [#allocation4], 1 }
 0x391   :  { %882 = vsyncpa [#allocation4 + $0x1], 1 }

</bundles_post_ra>
